<compile_context>
chip_gen: v7x
topology: tpu7x:2x2x1
jax: 0.10.0
libtpu: 0.0.40
codegen_flags: <defaults>
</compile_context>

<pallas_src>
import jax
import jax.numpy as jnp
from jax import lax
from jax.experimental import pallas as pl
from jax.experimental.pallas import tpu as pltpu


def _round_up(x, m):
    return ((x + m - 1) // m) * m


def _fused_conv_bn_prelu_kernel(xp_ref, w_ref, params_ref, o_ref):
    """One grid step = one (batch, lane-dense L_out tile).

    xp_ref     : (1, CK_p, TL)    bf16 im2col patches (contraction x lanes)
    w_ref      : (C_out_p, CK_p)  bf16 raw conv weight
    params_ref : (3, C_out_p, 1)  f32  [0]=BN scale, [1]=BN shift, [2]=PReLU alpha
    o_ref      : (1, C_out_p, TL) f32
    """
    # Conv1d as a single MXU matmul over the lane-dense length tile.
    y = jnp.dot(w_ref[...], xp_ref[0], preferred_element_type=jnp.float32)
    scale = params_ref[0]            # (C_out_p, 1)
    shift = params_ref[1]            # (C_out_p, 1)
    alpha = params_ref[2]            # (C_out_p, 1)
    # BatchNorm1d (eval): per-channel affine in f32 (scale NOT folded into the
    # bf16 weight -> no precision loss for small bn_var).
    y = y * scale + shift
    # Dropout(0.5): identity in eval mode.
    # PReLU (per-channel slope, broadcast over lanes).  Epilogue rides in VPU
    # slots with slack under the DMA / step-overhead bound.
    y = jnp.where(y >= 0, y, alpha * y)
    o_ref[0] = y.astype(o_ref.dtype)


def convolution_forward(x, conv_weight, bn_gamma, bn_beta, bn_mean, bn_var,
                        prelu_alpha, *, stride, eps=1e-5,
                        target_step_bytes=2 << 20,
                        vmem_tile_budget=24 << 20):
    """x: (N, C_in, L) float32.  Returns (N, C_out, L_out) float32."""
    N, C_in, L = x.shape
    C_out, _, K = conv_weight.shape
    L_out = (L - K) // stride + 1
    CK = C_in * K

    # ---- TPU-friendly padded sizes ------------------------------------------
    CK_p = _round_up(CK, 16)          # contraction dim, bf16 sublane packing
    C_out_p = _round_up(C_out, 8)     # f32 output sublane dim

    # ---- byte-aware lane tile -----------------------------------------------
    # Per lane column each step moves 2*CK_p (bf16 in) + 4*C_out_p (f32 out).
    bytes_per_lane = 2 * CK_p + 4 * C_out_p
    tl_from_target = max(128, (target_step_bytes // bytes_per_lane) // 128 * 128)
    tl_from_vmem = max(128, (vmem_tile_budget // (2 * bytes_per_lane)) // 128 * 128)
    total_l = _round_up(L_out, 128)
    TL = min(tl_from_target, tl_from_vmem, total_l)
    # Keep >= 2 grid steps when possible so v7x's two TensorCores both work.
    if N == 1 and TL >= total_l and total_l >= 256:
        TL = max(128, (total_l // 2) // 128 * 128)
    L_out_p = _round_up(L_out, TL)

    # ---- glue: fused im2col (gather -> reshape -> cast -> pad, one pass) ----
    # xp[n, ci*K + k, l] = x[n, ci, k + stride*l]
    idx = jnp.arange(K)[:, None] + stride * jnp.arange(L_out)[None, :]  # (K, L_out)
    xp_p = jnp.pad(
        x[:, :, idx].reshape(N, CK, L_out).astype(jnp.bfloat16),
        ((0, 0), (0, CK_p - CK), (0, L_out_p - L_out)))

    # Raw weight in bf16 (BN scale applied in f32 inside the kernel).
    w_p = jnp.pad(conv_weight.reshape(C_out, CK).astype(jnp.bfloat16),
                  ((0, C_out_p - C_out), (0, CK_p - CK)))

    # ---- BatchNorm (eval) affine + PReLU slope ------------------------------
    scale = (bn_gamma / jnp.sqrt(bn_var + eps)).astype(jnp.float32)   # (C_out,)
    shift = (bn_beta - bn_mean * scale).astype(jnp.float32)           # (C_out,)
    if prelu_alpha.size == C_out:
        alpha = prelu_alpha.reshape(-1).astype(jnp.float32)
    else:
        alpha = jnp.full((C_out,), prelu_alpha.reshape(()), jnp.float32)
    params = jnp.zeros((3, C_out_p, 1), jnp.float32)
    params = params.at[0, :C_out, 0].set(scale)
    params = params.at[1, :C_out, 0].set(shift)
    params = params.at[2, :C_out, 0].set(alpha)

    # ---- grid / specs --------------------------------------------------------
    grid = (N, L_out_p // TL)
    grid_spec = pltpu.PrefetchScalarGridSpec(
        num_scalar_prefetch=0,
        grid=grid,
        in_specs=[
            pl.BlockSpec((1, CK_p, TL), lambda n, j: (n, 0, j)),
            pl.BlockSpec((C_out_p, CK_p), lambda n, j: (0, 0)),
            pl.BlockSpec((3, C_out_p, 1), lambda n, j: (0, 0, 0)),
        ],
        out_specs=pl.BlockSpec((1, C_out_p, TL), lambda n, j: (n, 0, j)),
    )

    # Explicit VMEM limit: double-buffered tile + constants, with headroom.
    tile_bytes = CK_p * TL * 2 + C_out_p * TL * 4
    const_bytes = C_out_p * CK_p * 2 + 3 * C_out_p * 4
    footprint = 2 * (tile_bytes + const_bytes)
    vmem_limit_bytes = int(min(48 << 20, max(32 << 20, footprint + (4 << 20))))

    cost = pl.CostEstimate(
        flops=2 * N * L_out * C_out * CK,
        transcendentals=0,
        bytes_accessed=(N * CK_p * L_out_p * 2 + C_out_p * CK_p * 2
                        + 3 * C_out_p * 4 + N * C_out_p * L_out_p * 4),
    )

    out_p = pl.pallas_call(
        _fused_conv_bn_prelu_kernel,
        out_shape=jax.ShapeDtypeStruct((N, C_out_p, L_out_p), x.dtype),
        grid_spec=grid_spec,
        compiler_params=pltpu.CompilerParams(
            dimension_semantics=("parallel", "parallel"),
            vmem_limit_bytes=vmem_limit_bytes,
            allow_input_fusion=[True, False, False]),
        cost_estimate=cost,
    )(xp_p, w_p, params)

    # Output is already NCL; just slice off the padding.
    return out_p[:, :C_out, :L_out]


def _reference_forward(x, conv_weight, bn_gamma, bn_beta, bn_mean, bn_var,
                       prelu_alpha, *, stride, eps=1e-5):
    """Pure-JAX f32 reference (eval-mode semantics)."""
    y = lax.conv_general_dilated(
        x, conv_weight, window_strides=(stride,), padding="VALID",
        dimension_numbers=("NCH", "OIH", "NCH"))
    scale = bn_gamma / jnp.sqrt(bn_var + eps)
    shift = bn_beta - bn_mean * scale
    y = y * scale[None, :, None] + shift[None, :, None]
    a = jnp.asarray(prelu_alpha).reshape(())
    return jnp.where(y >= 0, y, a * y)


if __name__ == "__main__":
    # Small shapes consistent with the module: Conv1d over (N, C_in, L).
    N, C_in, C_out, K, S, L = 2, 4, 8, 3, 2, 16

    key = jax.random.PRNGKey(0)
    kx, kw = jax.random.split(key)

    x = jax.random.normal(kx, (N, C_in, L), dtype=jnp.float32)

    # Deterministic parameter init matching PyTorch defaults in spirit:
    #   Conv1d weight ~ kaiming-uniform-ish, BN gamma=1/beta=0/mean=0/var=1,
    #   PReLU alpha=0.25 (single shared parameter, PyTorch default).
    fan_in = C_in * K
    bound = 1.0 / (fan_in ** 0.5)
    conv_weight = jax.random.uniform(kw, (C_out, C_in, K), dtype=jnp.float32,
                                     minval=-bound, maxval=bound)
    bn_gamma = jnp.ones((C_out,), jnp.float32)
    bn_beta = jnp.zeros((C_out,), jnp.float32)
    bn_mean = jnp.zeros((C_out,), jnp.float32)
    bn_var = jnp.ones((C_out,), jnp.float32)
    prelu_alpha = jnp.array(0.25, jnp.float32)

    out = convolution_forward(x, conv_weight, bn_gamma, bn_beta, bn_mean,
                              bn_var, prelu_alpha, stride=S)
    out = jax.block_until_ready(out)

    ref = _reference_forward(x, conv_weight, bn_gamma, bn_beta, bn_mean,
                             bn_var, prelu_alpha, stride=S)
    assert out.shape == (N, C_out, (L - K) // S + 1)
    # bf16 matmul inputs (f32 accumulation / f32 BN+PReLU epilogue) ->
    # loosened tolerance vs the f32 reference.
    assert jnp.allclose(out, ref, atol=3e-2, rtol=3e-2), "mismatch vs reference"

    print("KERNEL_OK")
</pallas_src>

<mosaic_0001>
module attributes {stable_mosaic.version = 11 : i64} {
  func.func @_fused_conv_bn_prelu_kernel(%arg0: i32, %arg1: i32, %arg2: memref<1x16x128xbf16, #tpu.memory_space<vmem>>, %arg3: memref<8x16xbf16, #tpu.memory_space<vmem>>, %arg4: memref<3x8x1xf32, #tpu.memory_space<vmem>>, %arg5: memref<1x8x128xf32, #tpu.memory_space<vmem>>) attributes {dimension_semantics = [#tpu.dimension_semantics<parallel>, #tpu.dimension_semantics<parallel>], iteration_bounds = array<i64: 2, 1>, scalar_prefetch = 0 : i64, scratch_operands = 0 : i64, tpu.core_type = #tpu.core_type<tc>, window_params = [{transform_indices = @transform_0, window_bounds = array<i64: 1, 16, 128>}, {pipeline_mode = #tpu.pipeline_mode<synchronous>, transform_indices = @transform_1, window_bounds = array<i64: 8, 16>}, {pipeline_mode = #tpu.pipeline_mode<synchronous>, transform_indices = @transform_2, window_bounds = array<i64: 3, 8, 1>}, {transform_indices = @transform_3, window_bounds = array<i64: 1, 8, 128>}]} {
    %c0 = arith.constant 0 : index
    %c0_0 = arith.constant 0 : index
    %0 = vector.load %arg3[%c0, %c0_0] : memref<8x16xbf16, #tpu.memory_space<vmem>>, vector<8x16xbf16>
    %c0_1 = arith.constant 0 : index
    %c0_2 = arith.constant 0 : index
    %c0_3 = arith.constant 0 : index
    %1 = vector.load %arg2[%c0_1, %c0_2, %c0_3] : memref<1x16x128xbf16, #tpu.memory_space<vmem>>, vector<1x16x128xbf16>
    %2 = vector.shape_cast %1 : vector<1x16x128xbf16> to vector<16x128xbf16>
    %cst = arith.constant dense<0.000000e+00> : vector<8x128xf32>
    %3 = tpu.matmul %0, %2, %cst {dimension_numbers = #tpu.dot_dimension_numbers<[1], [0], [0], [1], [0, 0, 1, 1], [], []>} : vector<8x16xbf16>, vector<16x128xbf16>, vector<8x128xf32> -> vector<8x128xf32>
    %c0_4 = arith.constant 0 : index
    %c0_5 = arith.constant 0 : index
    %c0_6 = arith.constant 0 : index
    %4 = vector.load %arg4[%c0_4, %c0_5, %c0_6] : memref<3x8x1xf32, #tpu.memory_space<vmem>>, vector<1x8x1xf32>
    %5 = vector.shape_cast %4 : vector<1x8x1xf32> to vector<8x1xf32>
    %c1 = arith.constant 1 : index
    %c0_7 = arith.constant 0 : index
    %c0_8 = arith.constant 0 : index
    %6 = vector.load %arg4[%c1, %c0_7, %c0_8] : memref<3x8x1xf32, #tpu.memory_space<vmem>>, vector<1x8x1xf32>
    %7 = vector.shape_cast %6 : vector<1x8x1xf32> to vector<8x1xf32>
    %c2 = arith.constant 2 : index
    %c0_9 = arith.constant 0 : index
    %c0_10 = arith.constant 0 : index
    %8 = vector.load %arg4[%c2, %c0_9, %c0_10] : memref<3x8x1xf32, #tpu.memory_space<vmem>>, vector<1x8x1xf32>
    %9 = vector.shape_cast %8 : vector<1x8x1xf32> to vector<8x1xf32>
    %10 = vector.broadcast %5 : vector<8x1xf32> to vector<8x128xf32>
    %11 = arith.mulf %3, %10 : vector<8x128xf32>
    %12 = vector.broadcast %7 : vector<8x1xf32> to vector<8x128xf32>
    %13 = arith.addf %11, %12 : vector<8x128xf32>
    %cst_11 = arith.constant 0.000000e+00 : f32
    %14 = vector.broadcast %cst_11 : f32 to vector<8x128xf32>
    %15 = arith.cmpf oge, %13, %14 : vector<8x128xf32>
    %16 = vector.broadcast %9 : vector<8x1xf32> to vector<8x128xf32>
    %17 = arith.mulf %16, %13 : vector<8x128xf32>
    %18 = arith.select %15, %13, %17 : vector<8x128xi1>, vector<8x128xf32>
    %c0_12 = arith.constant 0 : index
    %c0_13 = arith.constant 0 : index
    %c0_14 = arith.constant 0 : index
    %19 = vector.load %arg5[%c0_12, %c0_13, %c0_14] : memref<1x8x128xf32, #tpu.memory_space<vmem>>, vector<1x8x128xf32>
    %20 = vector.shape_cast %19 : vector<1x8x128xf32> to vector<8x128xf32>
    %21 = vector.shape_cast %18 : vector<8x128xf32> to vector<1x8x128xf32>
    tpu.vector_store %arg5[%c0_12, %c0_13, %c0_14], %21 {strides = array<i32>} : memref<1x8x128xf32, #tpu.memory_space<vmem>>, vector<1x8x128xf32>,
    return
  }
  func.func @transform_0(%arg0: i32, %arg1: i32) -> (i32, i32, i32) {
    %c0_i32 = arith.constant 0 : i32
    %c0_i32_0 = arith.constant 0 : i32
    return %arg0, %c0_i32, %arg1 : i32, i32, i32
  }
  func.func @transform_1(%arg0: i32, %arg1: i32) -> (i32, i32) {
    %c0_i32 = arith.constant 0 : i32
    %c0_i32_0 = arith.constant 0 : i32
    %c0_i32_1 = arith.constant 0 : i32
    return %c0_i32, %c0_i32_0 : i32, i32
  }
  func.func @transform_2(%arg0: i32, %arg1: i32) -> (i32, i32, i32) {
    %c0_i32 = arith.constant 0 : i32
    %c0_i32_0 = arith.constant 0 : i32
    %c0_i32_1 = arith.constant 0 : i32
    %c0_i32_2 = arith.constant 0 : i32
    return %c0_i32, %c0_i32_0, %c0_i32_1 : i32, i32, i32
  }
  func.func @transform_3(%arg0: i32, %arg1: i32) -> (i32, i32, i32) {
    %c0_i32 = arith.constant 0 : i32
    %c0_i32_0 = arith.constant 0 : i32
    return %arg0, %c0_i32, %arg1 : i32, i32, i32
  }
}

</mosaic_0001>

<bundles_post_ra>
// kernel: tpu_custom_call.1
= control target key start
LH: loop header
LB: loop body
LE: loop exit
PB: predicated region body
PF: predicated region fallthrough
CT: control target
= control target key end

     0   :  { %8 = vsyncpa [#allocation3], 0  ;;  %s677_s0 = inlined_call_operand.vmem [shape: bf16[2,16,128], index: 0, kind: input, shape index: {}]   ;;  %s678_s1 = inlined_call_operand.vmem [shape: bf16[8,16], index: 1, kind: input, shape index: {}]   ;;  %s679_s2 = inlined_call_operand.vmem [shape: f32[3,8,1], index: 2, kind: input, shape index: {}]   ;;  %s680_s3 = inlined_call_operand.hbm [shape: f32[2,8,128], index: 3, kind: output, shape index: {}]  }
   0x1   :  { %10 = vsyncpa [#allocation3 + $0x1], 0  ;;  %s553_s12 = smov 0   ;;  %s555_s13 = smov 0  }
   0x2   :  { %s557_s14 = smov 0   ;;  %s559_s15 = smov 0  }
   0x3   :  { %s561_s16 = smov 0   ;;  %s563_s17 = smov 0  }
   0x4 LB: > { %s363_s18 = sadd.s32 4294967295, %s527_s17   ;;  %s364_s19 = sadd.s32 4294967294, %s527_s17   ;;  %s527_s17 = sphi %s563_s17, %s16_s17   ;;  %s523_s16 = sphi %s561_s16, %s687_s16   ;;  %s519_s15 = sphi %s559_s15, %s686_s15   ;;  %s515_s14 = sphi %s557_s14, %s685_s14   ;;  %s511_s13 = sphi %s555_s13, %s684_s13   ;;  %s507_s12 = sphi %s553_s12, %s683_s12  }
   0x5   : > { %s28_s20 = sadd.s32 1, %s523_s16  ;;  %s107_s21 = sadd.s32 1, %s515_s14 }
   0x6   : > { %p30_p0 = scmp.ge.s32.totalorder %s28_s20, 2  ;;  %p117_p1 = scmp.ne.s32.totalorder %s515_s14, %s511_s13 }
   0x7   : > { %p118_p2 = scmp.eq.s32.totalorder %s363_s18, 1  ;;  %p123_p3 = scmp.ne.s32.totalorder %s511_s13, %s507_s12 }
   0x8   : > { %s689_s20 = smov (%p30_p0, %s28_s20), 0  ;;  %p124_p5 = scmp.eq.s32.totalorder %s364_s19, 1 }
   0x9   : > { %p593_p4 = por %p118_p2, %p117_p1  ;;  %s102_s23 = ssub.s32 %s523_s16, %s689_s20 }
   0xa   : > { %p367_p6 = scmp.ge.s32.totalorder %s527_s17, 1  ;;  %p105_p7 = scmp.eq.s32.totalorder %s102_s23, 0 }
   0xb   : > { %p600_p8 = por %p124_p5, %p123_p3  ;;  %p159_p9 = scmp.lt.s32.totalorder %s527_s17, 3 }
   0xc   : > { %s606_s25 = scalar_select %p105_p7, %s515_s14, %s107_s21  }
   0xd   : > { %p160_p10 = pnand %p367_p6, %p159_p9 }
   0xe   : > { %p186_p11 = scmp.lt.s32.totalorder (!%p160_p10), %s519_s15, 1  ;;  %v529_v0 = vmov (!%p160_p10), 0.0   ;;  %vm530_vm0 = vmmov (!%p160_p10), 0   ;;  %v248_v1 = vld [vmem:[%s679_s2] sm:$0xff] (!%p160_p10)  ;;  %v374_v2 = vld [vmem:[%s679_s2 + $0x10] sm:$0xff] (!%p160_p10)  ;;  %v531_v3 = vmov (!%p160_p10), 0  }
   0xf   : > { %163 = sbr.rel (%p160_p10) target bundleno = 263 (0x107), region = 32  ;;  %382 = vmatprep.subr.bf16.mxu0 (!%p160_p10), %v529_v0  ;;  %384 = vmatprep.mubr.msk.bf16.mxu0 (!%p160_p10), %vm530_vm0, %v529_v0  ;;  %v373_v4 = vld [vmem:[%s679_s2 + $0x8] sm:$0xff] (!%p160_p10)  ;;  %v195_v6 = vld [vmem:[%s678_s1] sm:$0xf] (!%p160_p10)  ;;  %vm204_vm1 = vcmask (!%p160_p10), 130048   ;;  %s183_s18 = sand.u32 (!%p160_p10), 1, %s511_s13  }
  0x10   : > { %446 = vset.pattern.permute.xlu0 (!%p160_p10), %v531_v3  ;;  %447 = vset.pattern.permute.xlu1 (!%p160_p10), %v531_v3  ;;  %s368_s19 = sshll.u32 (!%p160_p10), %s183_s18, 3  ;;  %s376_s21 = sshll.u32 (!%p160_p10), %s519_s15, 7 }
  0x11   : > { %255 = vperm.xlu0 (!%p160_p10), %446, %v248_v1   ;;  %268 = vperm.xlu1 (!%p160_p10), %447, %v374_v2   ;;  %s185_s23 = scalar_lea.vmem (!%p160_p10), [#allocation2], %s368_s19  ;;  %s630_s29 = scalar_lea.hbm (!%p160_p10), %s680_s3, %s376_s21 }
  0x12   : > { %s289_s26 = sshll.u32 (!%p160_p10), %s185_s23, 4  ;;  %s632_s26 = int_to_ptr.vmem [resolvable:$true] %s289_s26 }
  0x15   : > { %261 = vperm.xlu0 (!%p160_p10), %446, %v373_v4  }
  0x16   : > { %s187_s30 = scalar_select %p186_p11, %s519_s15, 1 }
  0x17   : > { %s532_s15 = smov [#allocation2]  }
  0x18   : > { %s379_s4 = sshll.u32 %s187_s30, 3  ;;  %s275_s30 = scalar_lea.sflag [#allocation3], %s183_s18 }
  0x19   : > { %s193_s9 = scalar_lea.vmem %s677_s0, %s379_s4  ;;  %s449_s4 = scalar_lea.vmem %s632_s26, 128 }
  0x1a   : > { %v448_v5 = vld [vmem:[%s193_s9] sm:$0xff]   ;;  %p450_p12 = scmp.ne.s32.totalorder %s632_s26, %s449_s4  ;;  %s453_s5 = sshll.u32 %s532_s15, 4  ;;  %s454_s5 = int_to_ptr.vmem [resolvable:$false] %s453_s5 }
  0x1b   : > { %383 = vmatpush3.bf16.msra.mxu0 %v448_v5  ;;  %s455_s6 = scalar_lea.vmem %s454_s5, 256  ;;  %p456_p1 = scmp.lt.s32.totalorder %s632_s26, %s454_s5 }
  0x1c   : > { %p451_p13 = pnand %p450_p12, %p593_p4  ;;  %p457_p2 = scmp.lt.s32.totalorder %s455_s6, %s449_s4 }
  0x1e   : > { %385 = vmatmul.mubr.msk.bf16.vlgmr.msra.gmra.mrb[0].mxu0 %vm204_vm1, %v195_v6  ;;  %p452_p0 = pneg %p451_p13  ;;  %p458_p3 = por %p457_p2, %p456_p1 }
  0x20   : > { %p459_p5 = pnand %p458_p3, %p452_p0 }
  0x90   : > { %v256_v7 = vpop.permute.xlu0 %255  ;;  %v269_v11 = vpop.permute.xlu1 %268 }
  0x94   : > { %v262_v12 = vpop.permute.xlu0 %261 }
  0xf1   : > { %v242_v8 = vpop.f32.mrb[0].mxu0 }
  0xf2   : > { %v258_v9 = vmul.f32 %v256_v7, %v242_v8  ;;  %v386_v10 = vpop.f32.mrb[1].mxu0 }
  0xf3   : > { %v245_v13 = vpop.f32.mrb[2].mxu0 }
  0xf4   : > { %v264_v14 = vadd.f32 %v262_v12, %v258_v9  ;;  %v387_v15 = vpop.f32.mrb[3].mxu0 }
  0xf6   : > { %v271_v16 = vmul.f32 %v269_v11, %v264_v14  ;;  %vm265_vm2 = vcmp.ge.f32.partialorder %v264_v14, 0.0 }
  0xf8   : > { %v272_v17 = vsel %vm265_vm2, %v264_v14, %v271_v16 }
  0xf9   : > { %273 = vst [vmem:[%s185_s23] sm:$0xff] %v272_v17 }
  0xfa   : > { %462 = shalt.err (!%p459_p5)
}
  0xfb   : > { %s463_s7 = scalar_lea.hbm %s630_s29, 128  ;;  %s467_s10 = scalar_lea.hbm %s680_s3, 256 }
  0xfc   : > { %p464_p6 = scmp.ne.s32.totalorder %s630_s29, %s463_s7  ;;  %p468_p10 = scmp.lt.u32.totalorder %s630_s29, %s680_s3 }
  0xfd   : > { %p469_p11 = scmp.lt.u32.totalorder %s467_s10, %s463_s7  ;;  %p471_p13 = scmp.lt.u32.totalorder %s463_s7, %s630_s29 }
  0xfe   : > { %p465_p7 = pnand %p464_p6, %p593_p4 }
  0xff   : > { %p470_p12 = por %p469_p11, %p468_p10 }
 0x100   : > { %p466_p9 = pneg %p465_p7 }
 0x101   : > { %p472_p0 = por %p471_p13, %p470_p12 }
 0x103   : > { %p473_p1 = pnand %p472_p0, %p466_p9 }
 0x105   : > { %476 = shalt.err (!%p473_p1)
}
 0x106   : > { %388 = dma.vmem_to_hbm [thread:$0]  (%p593_p4), %s632_s26, 128, %s630_s29, %s275_s30  }
 0x107 PF: > { %p394_p2 = scmp.ge.s32.totalorder %s527_s17, 2  ;;  %s301_s19 = sand.u32 1, %s507_s12  }
 0x108   : > { %s302_s21 = scalar_lea.sflag [#allocation3], %s301_s19 }
 0x109   : > { %p391_p3 = pnand %p394_p2, %p600_p8 }
 0x10b   : > { %502 = dma.done.wait (!%p391_p3), %s302_s21, 128  }
 0x10c   : > { %504 = vsyncadd (!%p391_p3), %s302_s21, 4294967168  ;;  %s16_s17 = sadd.s32 1, %s527_s17   ;;  %s683_s12 = smov %s511_s13 }
 0x10d   : > { %p13_p5 = scmp.ge.s32.totalorder %s16_s17, 4   ;;  %s684_s13 = smov %s515_s14 }
 0x10e   : > { %s685_s14 = smov %s606_s25  ;;  %s686_s15 = smov %s523_s16 }
 0x10f   : > { %s687_s16 = smov %s689_s20  ;;  %15 = sbr.rel (!%p13_p5) target bundleno = 4 (0x4), region = 69 }
 0x116   :  { %307 = vsyncpa [#allocation3], 1 }
 0x117   :  { %309 = vsyncpa [#allocation3 + $0x1], 1 }

</bundles_post_ra>
